<compile_context>
chip_gen: v5e
topology: v5e:2x2
jax: 0.10.0
libtpu: 0.0.40
codegen_flags: <defaults>
</compile_context>

<pallas_src>
import jax
import jax.numpy as jnp
from jax import lax
from jax.experimental import pallas as pl
from jax.experimental.pallas import tpu as pltpu

LANES = 128
SUBLANES = 8
MAX_TILE_ROWS = 4096   # (4096,128) f32 tile = 2 MiB; 2 inputs x 2 bufs = 8 MiB VMEM


def _round_up(x, m):
    return ((x + m - 1) // m) * m


def _make_ce_kernel(tile_rows, rows, steps_per_core):
    r_groups = tile_rows // SUBLANES

    def kernel(t_ref, p_ref, fsum_ref, fcnt_ref, asum_ref):
        s = pl.program_id(1)

        @pl.when(s == 0)
        def _():
            fsum_ref[...] = jnp.zeros_like(fsum_ref)
            fcnt_ref[...] = jnp.zeros_like(fcnt_ref)
            asum_ref[...] = jnp.zeros_like(asum_ref)

        # Unclamped global block index; rows past `rows` (partial tail block or
        # clamped duplicate blocks) hold garbage and must be masked out.
        blk = pl.program_id(0) * steps_per_core + s
        row0 = blk * tile_rows
        row_ids = row0 + lax.broadcasted_iota(jnp.int32, (tile_rows, LANES), 0)
        valid = row_ids < rows

        # Cast inside the kernel (cheap VPU convert) instead of in the wrapper.
        t = t_ref[...].astype(jnp.float32)
        p = p_ref[...].astype(jnp.float32)
        diff = jnp.where(valid, jnp.abs(t - p), 0.0)
        filt = diff > 2.5

        f_part = jnp.where(filt, diff, 0.0).reshape(r_groups, SUBLANES, LANES)
        c_part = filt.astype(jnp.float32).reshape(r_groups, SUBLANES, LANES)
        a_part = diff.reshape(r_groups, SUBLANES, LANES)

        # Per-(sublane, lane) partial sums: plain VPU adds across vregs; the
        # single cross-lane reduce to a scalar happens once, in the wrapper.
        fsum_ref[...] += jnp.sum(f_part, axis=0)
        fcnt_ref[...] += jnp.sum(c_part, axis=0)
        asum_ref[...] += jnp.sum(a_part, axis=0)

    return kernel


def custom_ce_loss(y_true, y_pred):
    n = y_true.size
    t = jnp.ravel(y_true)
    p = jnp.ravel(y_pred)

    # Pad only the sub-128 remainder (zero for typical eye-gaze / image shapes,
    # so usually a free reshape).  Zero padding contributes nothing to any sum.
    # TODO(synk): when n % 128 != 0, jnp.pad implies one extra HBM copy; a 1-D
    # BlockSpec path could avoid it, at the cost of a less efficient layout.
    rem = (-n) % LANES
    if rem:
        t = jnp.pad(t, (0, rem))
        p = jnp.pad(p, (0, rem))
    rows = (n + rem) // LANES
    t = t.reshape(rows, LANES)
    p = p.reshape(rows, LANES)

    # Large streaming tile, balanced across blocks so the tail block wastes at
    # most 7 rows; always a multiple of 8 sublanes and <= MAX_TILE_ROWS.
    if rows <= MAX_TILE_ROWS:
        tile_rows = _round_up(rows, SUBLANES)
        total_blocks = 1
    else:
        n_blk = pl.cdiv(rows, MAX_TILE_ROWS)
        tile_rows = _round_up(pl.cdiv(rows, n_blk), SUBLANES)
        total_blocks = pl.cdiv(rows, tile_rows)

    # Leading "parallel" axis for v7x megacore; no-op reshape on v5e/v6e.
    n_cores = 2 if total_blocks >= 2 else 1
    steps = pl.cdiv(total_blocks, n_cores)
    last_blk = total_blocks - 1

    def in_map(c, s):
        # Clamp duplicated tail steps into range; the kernel masks them out.
        return (jnp.minimum(c * steps + s, last_blk), 0)

    acc_shape = jax.ShapeDtypeStruct((n_cores * SUBLANES, LANES), jnp.float32)
    acc_spec = pl.BlockSpec((SUBLANES, LANES), lambda c, s: (c, 0))

    fsum, fcnt, asum = pl.pallas_call(
        _make_ce_kernel(tile_rows, rows, steps),
        out_shape=(acc_shape, acc_shape, acc_shape),
        grid_spec=pltpu.PrefetchScalarGridSpec(
            num_scalar_prefetch=0,
            grid=(n_cores, steps),
            in_specs=[
                pl.BlockSpec((tile_rows, LANES), in_map),
                pl.BlockSpec((tile_rows, LANES), in_map),
            ],
            out_specs=[acc_spec, acc_spec, acc_spec],
        ),
        compiler_params=pltpu.CompilerParams(
            dimension_semantics=("parallel", "arbitrary"),
            vmem_limit_bytes=32 * 1024 * 1024),
    )(t, p)

    fsum_s = jnp.sum(fsum)
    fcnt_s = jnp.sum(fcnt)
    asum_s = jnp.sum(asum)

    mse = fsum_s / fcnt_s               # mean |diff| over diff > 2.5 (NaN if none pass)
    mse1 = asum_s / jnp.float32(n)      # mean |diff| over all elements
    # Mirrors torch: mse1 * (mse.item() / mse1.item()); numerically == mse.
    loss = mse1 * (mse / mse1)
    return loss


def _reference(y_true, y_pred):
    d = jnp.abs(jnp.ravel(y_true) - jnp.ravel(y_pred)).astype(jnp.float32)
    filt = d > 2.5
    mse = jnp.sum(jnp.where(filt, d, 0.0)) / jnp.sum(filt.astype(jnp.float32))
    mse1 = jnp.mean(d)
    return mse1 * (mse / mse1)


if __name__ == "__main__":
    key = jax.random.PRNGKey(0)
    k1, k2 = jax.random.split(key)
    # Eye-gaze style regression targets/predictions, NCHW-ish small shape.
    y_true = 3.0 * jax.random.normal(k1, (2, 4, 16, 16), dtype=jnp.float32)
    y_pred = 3.0 * jax.random.normal(k2, (2, 4, 16, 16), dtype=jnp.float32)

    loss = custom_ce_loss(y_true, y_pred)
    loss = jax.block_until_ready(loss)

    ref = _reference(y_true, y_pred)
    assert jnp.allclose(loss, ref, rtol=1e-5, atol=1e-6), (loss, ref)
    print("KERNEL_OK")
</pallas_src>

<mosaic_0001>
module attributes {stable_mosaic.version = 11 : i64} {
  func.func @kernel(%arg0: i32, %arg1: i32, %arg2: memref<16x128xf32, #tpu.memory_space<vmem>>, %arg3: memref<16x128xf32, #tpu.memory_space<vmem>>, %arg4: memref<8x128xf32, #tpu.memory_space<vmem>>, %arg5: memref<8x128xf32, #tpu.memory_space<vmem>>, %arg6: memref<8x128xf32, #tpu.memory_space<vmem>>) attributes {dimension_semantics = [#tpu.dimension_semantics<parallel>, #tpu.dimension_semantics<arbitrary>], iteration_bounds = array<i64: 1, 1>, scalar_prefetch = 0 : i64, scratch_operands = 0 : i64, tpu.core_type = #tpu.core_type<tc>, window_params = [{transform_indices = @transform_0, window_bounds = array<i64: 16, 128>}, {transform_indices = @transform_1, window_bounds = array<i64: 16, 128>}, {transform_indices = @transform_2, window_bounds = array<i64: 8, 128>}, {transform_indices = @transform_3, window_bounds = array<i64: 8, 128>}, {transform_indices = @transform_4, window_bounds = array<i64: 8, 128>}]} {
    %c0_i32 = arith.constant 0 : i32
    %0 = arith.cmpi eq, %arg1, %c0_i32 : i32
    %1 = arith.extui %0 : i1 to i32
    %c0_i32_0 = arith.constant 0 : i32
    %2 = arith.cmpi ne, %1, %c0_i32_0 : i32
    scf.if %2 {
      %cst_22 = arith.constant 0.000000e+00 : f32
      %38 = vector.broadcast %cst_22 : f32 to vector<8x128xf32>
      %c0_23 = arith.constant 0 : index
      %c0_24 = arith.constant 0 : index
      %39 = vector.load %arg4[%c0_23, %c0_24] : memref<8x128xf32, #tpu.memory_space<vmem>>, vector<8x128xf32>
      tpu.vector_store %arg4[%c0_23, %c0_24], %38 {strides = array<i32>} : memref<8x128xf32, #tpu.memory_space<vmem>>, vector<8x128xf32>,
      %cst_25 = arith.constant 0.000000e+00 : f32
      %40 = vector.broadcast %cst_25 : f32 to vector<8x128xf32>
      %c0_26 = arith.constant 0 : index
      %c0_27 = arith.constant 0 : index
      %41 = vector.load %arg5[%c0_26, %c0_27] : memref<8x128xf32, #tpu.memory_space<vmem>>, vector<8x128xf32>
      tpu.vector_store %arg5[%c0_26, %c0_27], %40 {strides = array<i32>} : memref<8x128xf32, #tpu.memory_space<vmem>>, vector<8x128xf32>,
      %cst_28 = arith.constant 0.000000e+00 : f32
      %42 = vector.broadcast %cst_28 : f32 to vector<8x128xf32>
      %c0_29 = arith.constant 0 : index
      %c0_30 = arith.constant 0 : index
      %43 = vector.load %arg6[%c0_29, %c0_30] : memref<8x128xf32, #tpu.memory_space<vmem>>, vector<8x128xf32>
      tpu.vector_store %arg6[%c0_29, %c0_30], %42 {strides = array<i32>} : memref<8x128xf32, #tpu.memory_space<vmem>>, vector<8x128xf32>,
    } else {
    }
    %c1_i32 = arith.constant 1 : i32
    %3 = arith.muli %arg0, %c1_i32 : i32
    %4 = arith.addi %3, %arg1 : i32
    %c16_i32 = arith.constant 16 : i32
    %5 = arith.muli %4, %c16_i32 : i32
    %6 = tpu.iota {dimensions = array<i32: 0>} : vector<16x128xi32>
    %7 = vector.broadcast %5 : i32 to vector<16x128xi32>
    %8 = arith.addi %7, %6 : vector<16x128xi32>
    %c16_i32_1 = arith.constant 16 : i32
    %9 = vector.broadcast %c16_i32_1 : i32 to vector<16x128xi32>
    %10 = arith.cmpi slt, %8, %9 : vector<16x128xi32>
    %c0 = arith.constant 0 : index
    %c0_2 = arith.constant 0 : index
    %11 = vector.load %arg2[%c0, %c0_2] : memref<16x128xf32, #tpu.memory_space<vmem>>, vector<16x128xf32>
    %c0_3 = arith.constant 0 : index
    %c0_4 = arith.constant 0 : index
    %12 = vector.load %arg3[%c0_3, %c0_4] : memref<16x128xf32, #tpu.memory_space<vmem>>, vector<16x128xf32>
    %13 = arith.subf %11, %12 : vector<16x128xf32>
    %14 = math.absf %13 : vector<16x128xf32>
    %cst = arith.constant 0.000000e+00 : f32
    %15 = vector.broadcast %cst : f32 to vector<16x128xf32>
    %16 = arith.select %10, %14, %15 : vector<16x128xi1>, vector<16x128xf32>
    %cst_5 = arith.constant 2.500000e+00 : f32
    %17 = vector.broadcast %cst_5 : f32 to vector<16x128xf32>
    %18 = arith.cmpf ogt, %16, %17 : vector<16x128xf32>
    %cst_6 = arith.constant 0.000000e+00 : f32
    %19 = vector.broadcast %cst_6 : f32 to vector<16x128xf32>
    %20 = arith.select %18, %16, %19 : vector<16x128xi1>, vector<16x128xf32>
    %21 = vector.shape_cast %20 : vector<16x128xf32> to vector<2x8x128xf32>
    %22 = arith.extui %18 : vector<16x128xi1> to vector<16x128xi32>
    %23 = arith.sitofp %22 : vector<16x128xi32> to vector<16x128xf32>
    %24 = vector.shape_cast %23 : vector<16x128xf32> to vector<2x8x128xf32>
    %25 = vector.shape_cast %16 : vector<16x128xf32> to vector<2x8x128xf32>
    %c0_7 = arith.constant 0 : index
    %c0_8 = arith.constant 0 : index
    %26 = vector.load %arg4[%c0_7, %c0_8] : memref<8x128xf32, #tpu.memory_space<vmem>>, vector<8x128xf32>
    %cst_9 = arith.constant dense<0.000000e+00> : vector<8x128xf32>
    %27 = vector.multi_reduction <add>, %21, %cst_9 [0] : vector<2x8x128xf32> to vector<8x128xf32>
    %28 = arith.addf %26, %27 : vector<8x128xf32>
    %c0_10 = arith.constant 0 : index
    %c0_11 = arith.constant 0 : index
    %29 = vector.load %arg4[%c0_10, %c0_11] : memref<8x128xf32, #tpu.memory_space<vmem>>, vector<8x128xf32>
    tpu.vector_store %arg4[%c0_10, %c0_11], %28 {strides = array<i32>} : memref<8x128xf32, #tpu.memory_space<vmem>>, vector<8x128xf32>,
    %c0_12 = arith.constant 0 : index
    %c0_13 = arith.constant 0 : index
    %30 = vector.load %arg5[%c0_12, %c0_13] : memref<8x128xf32, #tpu.memory_space<vmem>>, vector<8x128xf32>
    %cst_14 = arith.constant dense<0.000000e+00> : vector<8x128xf32>
    %31 = vector.multi_reduction <add>, %24, %cst_14 [0] : vector<2x8x128xf32> to vector<8x128xf32>
    %32 = arith.addf %30, %31 : vector<8x128xf32>
    %c0_15 = arith.constant 0 : index
    %c0_16 = arith.constant 0 : index
    %33 = vector.load %arg5[%c0_15, %c0_16] : memref<8x128xf32, #tpu.memory_space<vmem>>, vector<8x128xf32>
    tpu.vector_store %arg5[%c0_15, %c0_16], %32 {strides = array<i32>} : memref<8x128xf32, #tpu.memory_space<vmem>>, vector<8x128xf32>,
    %c0_17 = arith.constant 0 : index
    %c0_18 = arith.constant 0 : index
    %34 = vector.load %arg6[%c0_17, %c0_18] : memref<8x128xf32, #tpu.memory_space<vmem>>, vector<8x128xf32>
    %cst_19 = arith.constant dense<0.000000e+00> : vector<8x128xf32>
    %35 = vector.multi_reduction <add>, %25, %cst_19 [0] : vector<2x8x128xf32> to vector<8x128xf32>
    %36 = arith.addf %34, %35 : vector<8x128xf32>
    %c0_20 = arith.constant 0 : index
    %c0_21 = arith.constant 0 : index
    %37 = vector.load %arg6[%c0_20, %c0_21] : memref<8x128xf32, #tpu.memory_space<vmem>>, vector<8x128xf32>
    tpu.vector_store %arg6[%c0_20, %c0_21], %36 {strides = array<i32>} : memref<8x128xf32, #tpu.memory_space<vmem>>, vector<8x128xf32>,
    return
  }
  func.func @transform_0(%arg0: i32, %arg1: i32) -> (i32, i32) {
    %c1_i32 = arith.constant 1 : i32
    %0 = arith.muli %arg0, %c1_i32 : i32
    %1 = arith.addi %0, %arg1 : i32
    %c0_i32 = arith.constant 0 : i32
    %2 = arith.minsi %1, %c0_i32 : i32
    %c0_i32_0 = arith.constant 0 : i32
    %c0_i32_1 = arith.constant 0 : i32
    return %2, %c0_i32_0 : i32, i32
  }
  func.func @transform_1(%arg0: i32, %arg1: i32) -> (i32, i32) {
    %c1_i32 = arith.constant 1 : i32
    %0 = arith.muli %arg0, %c1_i32 : i32
    %1 = arith.addi %0, %arg1 : i32
    %c0_i32 = arith.constant 0 : i32
    %2 = arith.minsi %1, %c0_i32 : i32
    %c0_i32_0 = arith.constant 0 : i32
    %c0_i32_1 = arith.constant 0 : i32
    return %2, %c0_i32_0 : i32, i32
  }
  func.func @transform_2(%arg0: i32, %arg1: i32) -> (i32, i32) {
    %c0_i32 = arith.constant 0 : i32
    %c0_i32_0 = arith.constant 0 : i32
    return %arg0, %c0_i32 : i32, i32
  }
  func.func @transform_3(%arg0: i32, %arg1: i32) -> (i32, i32) {
    %c0_i32 = arith.constant 0 : i32
    %c0_i32_0 = arith.constant 0 : i32
    return %arg0, %c0_i32 : i32, i32
  }
  func.func @transform_4(%arg0: i32, %arg1: i32) -> (i32, i32) {
    %c0_i32 = arith.constant 0 : i32
    %c0_i32_0 = arith.constant 0 : i32
    return %arg0, %c0_i32 : i32, i32
  }
}

</mosaic_0001>

<bundles_post_ra>
// kernel: tpu_custom_call.1
= control target key start
LH: loop header
LB: loop body
LE: loop exit
PB: predicated region body
PF: predicated region fallthrough
CT: control target
= control target key end

     0   :  { %10 = vsyncpa [#allocation3], 0  ;;  %s354_s0 = inlined_call_operand.hbm [shape: f32[16,128], index: 0, kind: input, shape index: {}]   ;;  %s355_s1 = inlined_call_operand.hbm [shape: f32[16,128], index: 1, kind: input, shape index: {}]   ;;  %s356_s2 = inlined_call_operand.hbm [shape: f32[8,128], index: 2, kind: output, shape index: {0}]   ;;  %s357_s3 = inlined_call_operand.hbm [shape: f32[8,128], index: 3, kind: output, shape index: {1}]   ;;  %s358_s4 = inlined_call_operand.hbm [shape: f32[8,128], index: 4, kind: output, shape index: {2}]  }
   0x1   :  { %11 = vsyncpa [#allocation6], 0 }
   0x2   :  { %12 = vsyncpa [#allocation4], 0 }
   0x3   :  { %13 = vsyncpa [#allocation9], 0  ;;  %s24_s17 = sshll.u32 %s354_s0, 4  ;;  %s306_s18 = smov [#allocation2]   ;;  %s25_s17 = int_to_ptr.hbm [resolvable:$true] %s24_s17 }
   0x4   :  { %s26_s19 = sshll.u32 %s306_s18, 4  ;;  %s43_s22 = sshll.u32 %s355_s1, 4  ;;  %s27_s19 = int_to_ptr.vmem [resolvable:$true] %s26_s19  ;;  %s44_s22 = int_to_ptr.hbm [resolvable:$true] %s43_s22 }
   0x5   :  { %s307_s23 = smov 128   ;;  %s308_s24 = smov 8  }
   0x6   :  { %32 = dma.hbm_to_vmem [thread:$0]  %s25_s17, 256, %s27_s19, [#allocation3], %s307_s23, %s307_s23, %s308_s24  }
   0x7   :  { %s309_s25 = smov [#allocation5]  }
   0x8   :  { %s45_s26 = sshll.u32 %s309_s25, 4  ;;  %s46_s26 = int_to_ptr.vmem [resolvable:$true] %s45_s26 }
   0x9   :  { %51 = dma.hbm_to_vmem [thread:$0]  %s44_s22, 256, %s46_s26, [#allocation6], %s307_s23, %s307_s23, %s308_s24  }
   0xa   :  { %298 = dma.done.wait [#allocation3], 256  }
   0xb   :  { %299 = vsyncadd [#allocation3], 4294967040 }
   0xc   :  { %300 = dma.done.wait [#allocation6], 256  }
   0xd   :  { %301 = vsyncadd [#allocation6], 4294967040  ;;  %v85_v0 = vld [vmem:[#allocation2] sm:$0xff]  ;;  %v86_v1 = vld [vmem:[#allocation2 + $0x8] sm:$0xff]  ;;  %v310_v8 = vmov 0.0   ;;  %s311_s0 = smov [#allocation8]  }
   0xe   :  { %v87_v2 = vld [vmem:[#allocation5] sm:$0xff]  ;;  %v88_v3 = vld [vmem:[#allocation5 + $0x8] sm:$0xff]  ;;  %s131_s1 = sshll.u32 %s311_s0, 4  ;;  %s133_s29 = sshll.u32 %s357_s3, 4  ;;  %s132_s1 = int_to_ptr.vmem [resolvable:$true] %s131_s1  ;;  %s134_s29 = int_to_ptr.hbm [resolvable:$true] %s133_s29 }
   0xf   :  { %v89_v4 = vsub.f32 %v85_v0, %v87_v2  ;;  %v90_v5 = vsub.f32 %v86_v1, %v88_v3  ;;  %s312_s30 = smov [#allocation7]   ;;  %s122_s8 = sshll.u32 %s356_s2, 4  ;;  %s123_s8 = int_to_ptr.hbm [resolvable:$true] %s122_s8 }
  0x10   :  { %s120_s5 = sshll.u32 %s312_s30, 4  ;;  %s313_s9 = smov [#allocation10]   ;;  %s121_s5 = int_to_ptr.vmem [resolvable:$true] %s120_s5 }
  0x11   :  { %v91_v6 = vand.u32 2147483647, %v89_v4  ;;  %v92_v7 = vand.u32 2147483647, %v90_v5  ;;  %s142_s10 = sshll.u32 %s313_s9, 4  ;;  %s144_s13 = sshll.u32 %s358_s4, 4  ;;  %s143_s10 = int_to_ptr.vmem [resolvable:$true] %s142_s10  ;;  %s145_s13 = int_to_ptr.hbm [resolvable:$true] %s144_s13 }
  0x13   :  { %vm95_vm0 = vcmp.gt.f32.partialorder %v91_v6, 2.5  ;;  %vm96_vm1 = vcmp.gt.f32.partialorder %v92_v7, 2.5  ;;  %v112_v11 = vadd.f32 %v92_v7, %v91_v6 }
  0x14   :  { %v168_v9 = vsel %vm95_vm0, 1.0, %v310_v8  ;;  %v97_v10 = vsel %vm95_vm0, %v91_v6, 0.0  ;;  %v169_v12 = vsel %vm96_vm1, 1.0, %v310_v8  ;;  %v98_v13 = vsel %vm96_vm1, %v92_v7, 0.0 }
  0x15   :  { %v108_v14 = vadd.f32 %v169_v12, %v168_v9  ;;  %v104_v15 = vadd.f32 %v98_v13, %v97_v10  ;;  %114 = vst [vmem:[#allocation10] sm:$0xff] %v112_v11 }
  0x17   :  { %110 = vst [vmem:[#allocation8] sm:$0xff] %v108_v14 }
  0x18   :  { %106 = vst [vmem:[#allocation7] sm:$0xff] %v104_v15  ;;  %136 = dma.vmem_to_hbm [thread:$0]  %s132_s1, 128, %s134_s29, [#allocation9]  }
  0x19   :  { %125 = dma.vmem_to_hbm [thread:$0]  %s121_s5, 128, %s123_s8, [#allocation4]  }
  0x1a   :  { %147 = dma.vmem_to_hbm [thread:$0]  %s143_s10, 128, %s145_s13, [#allocation9]  }
  0x1b   :  { %302 = dma.done.wait [#allocation4], 128  }
  0x1c   :  { %303 = vsyncadd [#allocation4], 4294967168 }
  0x1d   :  { %304 = dma.done.wait [#allocation9], 256  }
  0x1e   :  { %305 = vsyncadd [#allocation9], 4294967040 }
  0x1f   :  { %160 = vsyncpa [#allocation3], 1 }
  0x20   :  { %161 = vsyncpa [#allocation6], 1 }
  0x21   :  { %162 = vsyncpa [#allocation4], 1 }
  0x22   :  { %163 = vsyncpa [#allocation9], 1 }

</bundles_post_ra>
